<compile_context>
chip_gen: v6e
topology: v6e:2x2x1
jax: 0.10.0
libtpu: 0.0.40
codegen_flags: <defaults>
</compile_context>

<pallas_src>
import functools
import itertools

import numpy as np
import jax
import jax.numpy as jnp
from jax import lax
from jax.experimental import pallas as pl
from jax.experimental.pallas import tpu as pltpu

K = 3
KVOL = K * K * K                      # 27 kernel offsets
VMEM_LIMIT = 48 * 1024 * 1024         # below v7x's 64 MiB physical VMEM


# ---------------------------------------------------------------------------
# Layer 1: plain tiled matmul (img2col for Cin=3 is materialized once in XLA)
# ---------------------------------------------------------------------------
def matmul_kernel(x_ref, w_ref, o_ref):
    o_ref[...] = jnp.dot(x_ref[...], w_ref[...],
                         preferred_element_type=jnp.float32).astype(o_ref.dtype)


def dense_matmul(x, w, *, tile=128, out_dtype=jnp.float32):
    n, kdim = x.shape
    _, cout = w.shape
    assert n % tile == 0
    return pl.pallas_call(
        matmul_kernel,
        out_shape=jax.ShapeDtypeStruct((n, cout), out_dtype),
        grid=(n // tile,),
        in_specs=[
            pl.BlockSpec((tile, kdim), lambda i: (i, 0)),
            # weights: constant block -> copied into VMEM once, reused each step
            pl.BlockSpec((kdim, cout), lambda i: (0, 0)),
        ],
        out_specs=pl.BlockSpec((tile, cout), lambda i: (i, 0)),
        compiler_params=pltpu.CompilerParams(
            dimension_semantics=("parallel",),
            vmem_limit_bytes=VMEM_LIMIT),
    )(x, w)


# ---------------------------------------------------------------------------
# Layer 2: submanifold conv, vectorized in-kernel gather + 27 MXU matmuls
# ---------------------------------------------------------------------------
def subm_conv_kernel(nbr_ref, feat_ref, w_ref, out_ref, *, use_take):
    """One tile of output rows of a 3x3x3 submanifold conv (no bias).

    nbr_ref : [tile, 27]      int32  rulebook slice for this tile (VMEM)
    feat_ref: [npad, cin]     f32    full input feature matrix (VMEM resident)
    w_ref   : [27, cin, cout] bf16   weights (VMEM resident)
    out_ref : [tile, cout]    f32
    Missing neighbours point at a guaranteed-all-zero row of `feat`.
    """
    tile, cout = out_ref.shape
    npad = feat_ref.shape[0]
    nbr = nbr_ref[...]
    feat = feat_ref[...]

    if not use_take:                          # one-hot MXU gather fallback
        feat_bf16 = feat.astype(jnp.bfloat16)
        cols = lax.broadcasted_iota(jnp.int32, (tile, npad), 1)

    acc = jnp.zeros((tile, cout), jnp.float32)
    for k in range(KVOL):                     # unrolled: 27 gathers + 27 dots
        if use_take:
            # vectorized row gather for the whole tile (no scalar row copies)
            g = jnp.take(feat, nbr[:, k], axis=0, mode="clip")   # [tile, cin]
        else:
            onehot = (nbr[:, k:k + 1] == cols).astype(jnp.bfloat16)
            g = jnp.dot(onehot, feat_bf16, preferred_element_type=jnp.float32)
        acc = acc + jnp.dot(g.astype(jnp.bfloat16), w_ref[k],
                            preferred_element_type=jnp.float32)
    out_ref[...] = acc.astype(out_ref.dtype)


def subm_conv(nbr, feat, w, *, tile=128, use_take=True, out_dtype=jnp.float32):
    """One SubMConv3d layer: out[n] = sum_k feat[nbr[n, k]] @ w[k]  (no bias)."""
    npad, cin = feat.shape
    kvol, cin_w, cout = w.shape
    assert kvol == KVOL and cin_w == cin and npad % tile == 0
    kernel = functools.partial(subm_conv_kernel, use_take=use_take)
    return pl.pallas_call(
        kernel,
        out_shape=jax.ShapeDtypeStruct((npad, cout), out_dtype),
        grid=(npad // tile,),
        in_specs=[
            pl.BlockSpec((tile, KVOL), lambda i: (i, 0)),          # rulebook tile
            # feature matrix & weights: constant blocks, copied to VMEM once.
            # TODO(synk): at realistic N switch feat to memory_space=pl.ANY +
            #   double-buffered paged DMA gather (v7x 64 MiB VMEM budget).
            pl.BlockSpec((npad, cin), lambda i: (0, 0)),
            pl.BlockSpec((KVOL, cin, cout), lambda i: (0, 0, 0)),
        ],
        out_specs=pl.BlockSpec((tile, cout), lambda i: (i, 0)),
        compiler_params=pltpu.CompilerParams(
            dimension_semantics=("parallel",),
            vmem_limit_bytes=VMEM_LIMIT),
    )(nbr, feat, w)


def build_neighbor_table(coors_np, spatial_shape, batch_size, zero_idx):
    """spconv-style rulebook: dense index grid (Net2.self.grid) + 3x3x3 lookups."""
    D, H, W = spatial_shape
    n = coors_np.shape[0]
    grid = np.full((batch_size, D, H, W), zero_idx, dtype=np.int32)   # "-1" grid
    b, z, y, x = (coors_np[:, 0], coors_np[:, 1], coors_np[:, 2], coors_np[:, 3])
    grid[b, z, y, x] = np.arange(n, dtype=np.int32)
    nbr = np.full((n, KVOL), zero_idx, dtype=np.int32)
    for k, (dz, dy, dx) in enumerate(itertools.product([-1, 0, 1], repeat=3)):
        nz, ny, nx = z + dz, y + dy, x + dx
        valid = (nz >= 0) & (nz < D) & (ny >= 0) & (ny < H) & (nx >= 0) & (nx < W)
        looked = grid[b, np.clip(nz, 0, D - 1), np.clip(ny, 0, H - 1),
                      np.clip(nx, 0, W - 1)]
        nbr[:, k] = np.where(valid, looked, zero_idx)
    return nbr


if __name__ == "__main__":
    key = jax.random.PRNGKey(0)
    k_coord, k_feat, k_w1, k_w2 = jax.random.split(key, 4)

    # Net2 forward: features [N, 3], coors [N, 4] (batch, z, y, x), batch_size=1,
    # spatial_shape=(16, 16, 16); two 3x3x3 SubMConv3d (no bias) sharing
    # indice_key 'c0' => one rulebook reused by both layers.
    shape = (16, 16, 16)
    batch_size = 1
    cin_real, cout = 3, 128
    n_active = 200
    tile = 128                     # v5e MXU fill; grid=2 keeps both v7x TCs busy
    D, H, W = shape

    # unique active voxel coordinates
    flat = np.asarray(jax.random.choice(k_coord, D * H * W, shape=(n_active,),
                                        replace=False))
    zz, yy, xx = np.unravel_index(flat, (D, H, W))
    coors = np.stack([np.zeros(n_active, np.int32), zz.astype(np.int32),
                      yy.astype(np.int32), xx.astype(np.int32)], axis=1)
    features = jax.random.normal(k_feat, (n_active, cin_real), dtype=jnp.float32)

    # pad rows: >= n_active + 1 (guaranteed zero row) and a multiple of tile
    n_pad = ((n_active + 1 + tile - 1) // tile) * tile
    zero_idx = n_active            # all-zero sentinel row for missing neighbours

    nbr = build_neighbor_table(coors, shape, batch_size, zero_idx)
    nbr_pad = np.full((n_pad, KVOL), zero_idx, dtype=np.int32)
    nbr_pad[:n_active] = nbr
    nbr_j = jnp.asarray(nbr_pad)                         # [n_pad, 27] int32

    # ---- layer 1: img2col in XLA (tiny, Cin=3), Pallas matmul --------------
    feat1 = jnp.zeros((n_pad, cin_real), jnp.float32).at[:n_active].set(features)
    k1 = KVOL * cin_real                                 # 81
    k1_pad = 128
    g1 = feat1[nbr_j].reshape(n_pad, k1)                 # [n_pad, 81]
    g1 = jnp.pad(g1, ((0, 0), (0, k1_pad - k1))).astype(jnp.bfloat16)

    w1 = 0.1 * jax.random.normal(k_w1, (KVOL, cin_real, cout), dtype=jnp.float32)
    w1_col = jnp.zeros((k1_pad, cout), jnp.float32).at[:k1].set(
        w1.reshape(k1, cout)).astype(jnp.bfloat16)

    out1 = dense_matmul(g1, w1_col, tile=tile)           # [n_pad, 128] f32

    # ---- layer 2: Pallas submanifold conv with in-kernel vector gather -----
    w2 = (0.1 * jax.random.normal(k_w2, (KVOL, cout, cout),
                                  dtype=jnp.float32)).astype(jnp.bfloat16)
    try:
        out2 = jax.block_until_ready(
            subm_conv(nbr_j, out1, w2, tile=tile, use_take=True))
    except Exception:
        # this jax/Mosaic build can't lower the vector gather: one-hot fallback
        out2 = jax.block_until_ready(
            subm_conv(nbr_j, out1, w2, tile=tile, use_take=False))

    out_features = out2[:n_active]      # SparseConvTensor features [N, 128]

    # ---- pure-JAX reference with identical bf16 operand rounding -----------
    r1 = jnp.dot(g1.astype(jnp.float32), w1_col.astype(jnp.float32))
    r2 = jnp.einsum('nkc,kcd->nd',
                    r1[nbr_j].astype(jnp.bfloat16).astype(jnp.float32),
                    w2.astype(jnp.float32))
    np.testing.assert_allclose(np.asarray(out1), np.asarray(r1),
                               rtol=1e-3, atol=1e-3)
    np.testing.assert_allclose(np.asarray(out2), np.asarray(r2),
                               rtol=1e-2, atol=1e-2)
    assert out_features.shape == (n_active, cout)

    print("KERNEL_OK")
</pallas_src>

<mosaic_0001>
module attributes {stable_mosaic.version = 11 : i64} {
  func.func @matmul_kernel(%arg0: i32, %arg1: memref<128x128xbf16, #tpu.memory_space<vmem>>, %arg2: memref<128x128xbf16, #tpu.memory_space<vmem>>, %arg3: memref<128x128xf32, #tpu.memory_space<vmem>>) attributes {dimension_semantics = [#tpu.dimension_semantics<parallel>], iteration_bounds = array<i64: 2>, scalar_prefetch = 0 : i64, scratch_operands = 0 : i64, tpu.core_type = #tpu.core_type<tc>, window_params = [{transform_indices = @transform_0, window_bounds = array<i64: 128, 128>}, {pipeline_mode = #tpu.pipeline_mode<synchronous>, transform_indices = @transform_1, window_bounds = array<i64: 128, 128>}, {transform_indices = @transform_2, window_bounds = array<i64: 128, 128>}]} {
    %c0 = arith.constant 0 : index
    %c0_0 = arith.constant 0 : index
    %0 = vector.load %arg1[%c0, %c0_0] : memref<128x128xbf16, #tpu.memory_space<vmem>>, vector<128x128xbf16>
    %c0_1 = arith.constant 0 : index
    %c0_2 = arith.constant 0 : index
    %1 = vector.load %arg2[%c0_1, %c0_2] : memref<128x128xbf16, #tpu.memory_space<vmem>>, vector<128x128xbf16>
    %cst = arith.constant dense<0.000000e+00> : vector<128x128xf32>
    %2 = tpu.matmul %0, %1, %cst {dimension_numbers = #tpu.dot_dimension_numbers<[1], [0], [0], [1], [0, 0, 1, 1], [], []>} : vector<128x128xbf16>, vector<128x128xbf16>, vector<128x128xf32> -> vector<128x128xf32>
    %c0_3 = arith.constant 0 : index
    %c0_4 = arith.constant 0 : index
    %3 = vector.load %arg3[%c0_3, %c0_4] : memref<128x128xf32, #tpu.memory_space<vmem>>, vector<128x128xf32>
    tpu.vector_store %arg3[%c0_3, %c0_4], %2 {strides = array<i32>} : memref<128x128xf32, #tpu.memory_space<vmem>>, vector<128x128xf32>,
    return
  }
  func.func @transform_0(%arg0: i32) -> (i32, i32) {
    %c0_i32 = arith.constant 0 : i32
    %c0_i32_0 = arith.constant 0 : i32
    return %arg0, %c0_i32 : i32, i32
  }
  func.func @transform_1(%arg0: i32) -> (i32, i32) {
    %c0_i32 = arith.constant 0 : i32
    %c0_i32_0 = arith.constant 0 : i32
    %c0_i32_1 = arith.constant 0 : i32
    return %c0_i32, %c0_i32_0 : i32, i32
  }
  func.func @transform_2(%arg0: i32) -> (i32, i32) {
    %c0_i32 = arith.constant 0 : i32
    %c0_i32_0 = arith.constant 0 : i32
    return %arg0, %c0_i32 : i32, i32
  }
}

</mosaic_0001>

<bundles_post_ra>
// kernel: tpu_custom_call.1
= control target key start
LH: loop header
LB: loop body
LE: loop exit
PB: predicated region body
PF: predicated region fallthrough
CT: control target
= control target key end

     0   :  { %7 = vsyncpa [#allocation3], 0  ;;  %s1052_s0 = inlined_call_operand.hbm [shape: bf16[256,128], index: 0, kind: input, shape index: {}]   ;;  %s1053_s1 = inlined_call_operand.hbm [shape: bf16[128,128], index: 1, kind: input, shape index: {}]   ;;  %s1054_s2 = inlined_call_operand.hbm [shape: f32[256,128], index: 2, kind: output, shape index: {}]  }
   0x1   :  { %9 = vsyncpa [#allocation3 + $0x1], 0 }
   0x2   :  { %10 = vsyncpa [#allocation6], 0 }
   0x3   :  { %11 = vsyncpa [#allocation4], 0 }
   0x4   :  { %13 = vsyncpa [#allocation4 + $0x1], 0  ;;  %s839_s9 = smov 0   ;;  %s841_s10 = smov 0  }
   0x5   :  { %s843_s11 = smov 0   ;;  %s845_s12 = smov 0  }
   0x6 LB: > { %s860_s13 = sadd.s32 4294967295, %s815_s12   ;;  %s518_s14 = sadd.s32 4294967294, %s815_s12   ;;  %s815_s12 = sphi %s845_s12, %s1076_s12   ;;  %s811_s11 = sphi %s843_s11, %s1075_s11   ;;  %s807_s10 = sphi %s841_s10, %s1074_s10   ;;  %s803_s9 = sphi %s839_s9, %s1073_s9  }
   0x7   : > { %p39_p0 = scmp.ne.s32.totalorder %s807_s10, %s803_s9  ;;  %p1055_p1 = scmp.eq.s32.totalorder %s860_s13, 0 }
   0x8   : > { %p90_p3 = scmp.eq.s32.totalorder %s518_s14, 1  ;;  %p519_p5 = scmp.ge.s32.totalorder %s815_s12, 1 }
   0x9   : > { %p869_p4 = por %p1055_p1, %p39_p0  ;;  %p97_p7 = scmp.lt.s32.totalorder %s815_s12, 3 }
   0xa   : > { %p874_p6 = por %p90_p3, %p39_p0  ;;  %s817_s18 = smov [#allocation5]  }
   0xb   : > { %s1059_s15 = scalar_select %p869_p4, 1, 0 }
   0xc   : > { %s1060_s16 = scalar_select %p874_p6, 1, 0 }
   0xd   : > { %p879_p8 = pnand %p519_p5, %p97_p7  ;;  %s109_s19 = sshll.u32 %s817_s18, 4  ;;  %s110_s19 = int_to_ptr.vmem [resolvable:$true] %s109_s19 }
   0xe   : > { %s893_s21 = sadd.s32 1, %s815_s12   ;;  %s26_s22 = sadd.s32 1, %s811_s11 }
   0xf   : > { %s1061_s17 = scalar_select %p879_p8, 1, 0 }
  0x10   : > { %p624_p9 = pneg %p879_p8  ;;  %s23_s23 = ssub.s32 %s815_s12, %s893_s21 }
  0x11   : > { %s704_s24 = scalar_lea.vmem %s110_s19, 1024  ;;  %p712_p5 = scmp.lt.s32.totalorder %s110_s19, %s110_s19 }
  0x12   : > { %p888_p11 = pnand %p624_p9, %p1055_p1  ;;  %p705_p13 = scmp.ne.s32.totalorder %s110_s19, %s704_s24 }
  0x13   : > { %p713_p7 = scmp.lt.s32.totalorder %s704_s24, %s704_s24 }
  0x14   : > { %p695_p12 = pneg %p888_p11 }
  0x15   : > { %p714_p10 = por %p713_p7, %p712_p5 }
  0x16   : > { %p707_p0 = pnand %p705_p13, %p695_p12 }
  0x18   : > { %p708_p3 = pneg %p707_p0 }
  0x1a   : > { %p715_p2 = pnand %p714_p10, %p708_p3 }
  0x1c   : > { %718 = shalt.err (!%p715_p2)
}
  0x1d   : > { %s818_s25 = smov 64   ;;  %s819_s26 = smov 4  }
  0x1e   : > { %627 = dma.hbm_to_vmem [thread:$0]  (!%p888_p11), %s1053_s1, 1024, %s110_s19, [#allocation6], %s818_s25, %s818_s25, %s819_s26  }
  0x1f   : > { %p24_p2 = scmp.eq.s32.totalorder %s23_s23, 0  ;;  %p33_p9 = scmp.ne.s32.totalorder %s811_s11, %s807_s10 }
  0x20   : > { %p34_p10 = scmp.eq.s32.totalorder %s815_s12, 0  ;;  %p637_p12 = scmp.lt.s32.totalorder %s815_s12, 2 }
  0x21   : > { %s913_s29 = scalar_select %p24_p2, %s811_s11, %s26_s22  }
  0x22   : > { %p35_p13 = por %p34_p10, %p33_p9  ;;  %p1063_p0 = scmp.eq.s32.totalorder %s860_s13, 1 }
  0x23   : > { %s123_s3 = sand.u32 1, %s811_s11   ;;  %s550_s4 = sshll.u32 %s815_s12, 10 }
  0x24   : > { %p917_p3 = por %p1063_p0, %p33_p9  ;;  %s522_s5 = sshll.u32 %s123_s3, 6 }
  0x25   : > { %s926_s8 = scalar_lea.hbm %s1052_s0, %s550_s4  ;;  %s127_s14 = scalar_lea.vmem [#allocation2], %s522_s5 }
  0x26   : > { %s1064_s30 = scalar_select %p917_p3, 1, 0 }
  0x27   : > { %s134_s18 = sshll.u32 %s127_s14, 4  ;;  %p928_p11 = pnand %p637_p12, %p35_p13  ;;  %s932_s18 = int_to_ptr.vmem [resolvable:$true] %s134_s18 }
  0x28   : > { %s934_s20 = scalar_lea.sflag [#allocation3], %s123_s3  ;;  %s719_s22 = scalar_lea.hbm %s926_s8, 1024 }
  0x29   : > { %p720_p5 = scmp.ne.s32.totalorder %s926_s8, %s719_s22  ;;  %p721_p7 = pneg %p928_p11 }
  0x2a   : > { %s724_s27 = scalar_lea.hbm %s1052_s0, 2048  ;;  %p725_p10 = scmp.lt.s32.totalorder %s926_s8, %s1052_s0 }
  0x2b   : > { %p722_p2 = pnand %p721_p7, %p720_p5  ;;  %p726_p12 = scmp.lt.s32.totalorder %s724_s27, %s719_s22 }
  0x2d   : > { %p723_p9 = pneg %p722_p2  ;;  %p727_p13 = por %p726_p12, %p725_p10 }
  0x2f   : > { %p728_p0 = pnand %p727_p13, %p723_p9 }
  0x31   : > { %731 = shalt.err (!%p728_p0)
}
  0x32   : > { %s732_s3 = scalar_lea.vmem %s932_s18, 1024  ;;  %s820_s5 = smov [#allocation2]  }
  0x33   : > { %p733_p1 = scmp.ne.s32.totalorder %s932_s18, %s732_s3  ;;  %s737_s6 = sshll.u32 %s820_s5, 4  ;;  %s738_s6 = int_to_ptr.vmem [resolvable:$false] %s737_s6 }
  0x34   : > { %s739_s7 = scalar_lea.vmem %s738_s6, 2048  ;;  %p740_p2 = scmp.lt.s32.totalorder %s932_s18, %s738_s6 }
  0x35   : > { %p735_p6 = pnand %p733_p1, %p721_p7  ;;  %p741_p3 = scmp.lt.s32.totalorder %s739_s7, %s732_s3 }
  0x37   : > { %p736_p5 = pneg %p735_p6  ;;  %p742_p4 = por %p741_p3, %p740_p2 }
  0x39   : > { %p743_p8 = pnand %p742_p4, %p736_p5 }
  0x3b   : > { %746 = shalt.err (!%p743_p8)
}
  0x3c   : > { %631 = dma.hbm_to_vmem [thread:$0]  (!%p928_p11), %s926_s8, 1024, %s932_s18, %s934_s20, %s818_s25, %s818_s25, %s819_s26  }
  0x3d   : > { %p1066_p1 = scmp.ne.s32.totalorder %s1061_s17, 0 }
  0x3e   : > { %s961_s14 = sand.u32 (!%p1066_p1), 1, %s807_s10   ;;  %p1067_p4 = scmp.ne.s32.totalorder (!%p1066_p1), %s1059_s15, 0 }
  0x3f   : > { %146 = sbr.rel (%p1066_p1) target bundleno = 326 (0x146), region = 28  ;;  %s526_s22 = sshll.u32 (!%p1066_p1), %s961_s14, 6 }
  0x40   : > { %s149_s23 = scalar_lea.sflag (!%p1066_p1), [#allocation3], %s961_s14  ;;  %s965_s24 = scalar_lea.vmem (!%p1066_p1), [#allocation2], %s526_s22 }
  0x44   : > { %790 = dma.done.wait (%p1067_p4), %s149_s23, 1024  }
  0x45   : > { %792 = vsyncadd (%p1067_p4), %s149_s23, 4294966272  ;;  %p1068_p6 = scmp.eq.s32.totalorder %s860_s13, 0 }
  0x47   : > { %794 = dma.done.wait (%p1068_p6), [#allocation6], 1024   ;;  %p1069_p8 = pmov %p1068_p6 }
  0x48   : > { %v677_v0 = vld [vmem:[#allocation5 + $0x38] sm:$0xff]   ;;  %v678_v1 = vld [vmem:[#allocation5 + $0x30] sm:$0xff]   ;;  %v679_v2 = vld [vmem:[#allocation5 + $0x28] sm:$0xff]   ;;  %s528_s15 = sshll.u32 %s961_s14, 7  ;;  %s551_s25 = sshll.u32 %s860_s13, 11 }
  0x49   : > { %796 = vsyncadd (%p1069_p8), [#allocation6], 4294966272  ;;  %568 = vmatprep.subr.bf16.mxu0 %v677_v0  ;;  %600 = vmatprep.subr.bf16.mxu1 %v677_v0  ;;  %v680_v3 = vld [vmem:[#allocation5 + $0x20] sm:$0xff]   ;;  %v681_v6 = vld [vmem:[#allocation5 + $0x18] sm:$0xff]   ;;  %s984_s17 = scalar_lea.vmem [#allocation7], %s528_s15  ;;  %s1003_s19 = scalar_lea.hbm %s1054_s2, %s551_s25 }
  0x4a   : > { %569 = vmatpush3.bf16.msra.mxu0 %v677_v0  ;;  %608 = vmatpush3.bf16.msra.mxu1 %v677_v0  ;;  %v685_v4 = vld [vmem:[%s965_s24] sm:$0xff]   ;;  %v682_v7 = vld [vmem:[#allocation5 + $0x10] sm:$0xff]   ;;  %v683_v8 = vld [vmem:[#allocation5 + $0x8] sm:$0xff]   ;;  %s435_s26 = sshll.u32 %s984_s17, 4  ;;  %s422_s13 = scalar_lea.sflag [#allocation4], %s961_s14  ;;  %s1005_s26 = int_to_ptr.vmem [resolvable:$true] %s435_s26 }
  0x4b   : > { %570 = vmatprep.subr.bf16.mxu0 %v678_v1  ;;  %601 = vmatprep.subr.bf16.mxu1 %v678_v1  ;;  %v686_v5 = vld [vmem:[%s965_s24 + $0x20] sm:$0xff]   ;;  %v687_v10 = vld [vmem:[%s965_s24 + $0x8] sm:$0xff]   ;;  %v689_v12 = vld [vmem:[%s965_s24 + $0x10] sm:$0xff]   ;;  %s747_s20 = scalar_lea.vmem %s1005_s26, 2048  ;;  %p1070_p11 = scmp.ne.s32.totalorder %s1064_s30, 0 }
  0x4c   : > { %584 = vmatprep.mubr.bf16.mxu0 %v685_v4  ;;  %592 = vmatprep.mubr.bf16.mxu1 %v686_v5  ;;  %v684_v9 = vld [vmem:[#allocation5] sm:$0xff]   ;;  %v688_v11 = vld [vmem:[%s965_s24 + $0x28] sm:$0xff]   ;;  %v690_v13 = vld [vmem:[%s965_s24 + $0x30] sm:$0xff]   ;;  %p748_p3 = scmp.ne.s32.totalorder %s1005_s26, %s747_s20  ;;  %s821_s27 = smov [#allocation7]  }
  0x4d   : > { %v691_v14 = vld [vmem:[%s965_s24 + $0x18] sm:$0xff]   ;;  %s751_s28 = sshll.u32 %s821_s27, 4  ;;  %s752_s28 = int_to_ptr.vmem [resolvable:$false] %s751_s28 }
  0x4e   : > { %571 = vmatpush3.bf16.msra.mxu0 %v678_v1  ;;  %609 = vmatpush3.bf16.msra.mxu1 %v678_v1  ;;  %v692_v15 = vld [vmem:[%s965_s24 + $0x38] sm:$0xff]   ;;  %p749_p7 = pnand %p748_p3, %p1070_p11  ;;  %s753_s4 = scalar_lea.vmem %s752_s28, 4096 }
  0x4f   : > { %572 = vmatprep.subr.bf16.mxu0 %v679_v2  ;;  %602 = vmatprep.subr.bf16.mxu1 %v679_v2  ;;  %p754_p10 = scmp.lt.s32.totalorder %s1005_s26, %s752_s28  ;;  %p755_p12 = scmp.lt.s32.totalorder %s753_s4, %s747_s20 }
  0x50   : > { %p750_p9 = pneg %p749_p7 }
  0x51   : > { %p756_p13 = por %p755_p12, %p754_p10 }
  0x52   : > { %573 = vmatpush3.bf16.msra.mxu0 %v679_v2  ;;  %610 = vmatpush3.bf16.msra.mxu1 %v679_v2 }
  0x53   : > { %574 = vmatprep.subr.bf16.mxu0 %v680_v3  ;;  %603 = vmatprep.subr.bf16.mxu1 %v680_v3  ;;  %p757_p0 = pnand %p756_p13, %p750_p9 }
  0x56   : > { %575 = vmatpush3.bf16.msra.mxu0 %v680_v3  ;;  %611 = vmatpush3.bf16.msra.mxu1 %v680_v3 }
  0x57   : > { %576 = vmatprep.subr.bf16.mxu0 %v681_v6  ;;  %604 = vmatprep.subr.bf16.mxu1 %v681_v6 }
  0x5a   : > { %577 = vmatpush3.bf16.msra.mxu0 %v681_v6  ;;  %612 = vmatpush3.bf16.msra.mxu1 %v681_v6 }
  0x5b   : > { %578 = vmatprep.subr.bf16.mxu0 %v682_v7  ;;  %605 = vmatprep.subr.bf16.mxu1 %v682_v7 }
  0x5e   : > { %579 = vmatpush3.bf16.msra.mxu0 %v682_v7  ;;  %613 = vmatpush3.bf16.msra.mxu1 %v682_v7 }
  0x5f   : > { %580 = vmatprep.subr.bf16.mxu0 %v683_v8  ;;  %606 = vmatprep.subr.bf16.mxu1 %v683_v8 }
  0x62   : > { %581 = vmatpush3.bf16.msra.mxu0 %v683_v8  ;;  %614 = vmatpush3.bf16.msra.mxu1 %v683_v8 }
  0x63   : > { %582 = vmatprep.subr.bf16.mxu0 %v684_v9  ;;  %607 = vmatprep.subr.bf16.mxu1 %v684_v9 }
  0x66   : > { %583 = vmatpush3.bf16.msra.mxu0 %v684_v9  ;;  %615 = vmatpush3.bf16.msra.mxu1 %v684_v9 }
  0x69   : > { %585 = vmatmul.mubr.bf16.vlgmr.msra.gmra.mxu0 %v687_v10  ;;  %593 = vmatmul.mubr.bf16.vlgmr.msra.gmra.mxu1 %v688_v11 }
  0x6a   : > { %588 = vmatprep.mubr.bf16.mxu0 %v689_v12  ;;  %596 = vmatprep.mubr.bf16.mxu1 %v690_v13 }
  0x71   : > { %589 = vmatmul.mubr.bf16.gmra.mxu0 %v691_v14  ;;  %597 = vmatmul.mubr.bf16.gmra.mxu1 %v692_v15 }
 0x129   : > { %v586_v16 = vpop.f32.mrf.mxu0  ;;  %v594_v17 = vpop.f32.mrf.mxu1 }
 0x12a   : > { %407 = vst [vmem:[%s984_s17 + $0x10] sm:$0xff] %v586_v16  ;;  %415 = vst [vmem:[%s984_s17 + $0x50] sm:$0xff] %v594_v17 }
 0x12b   : > { %v342_v18 = vpop.f32.mrf.mxu0  ;;  %v374_v19 = vpop.f32.mrf.mxu1 }
 0x12c   : > { %405 = vst [vmem:[%s984_s17] sm:$0xff] %v342_v18  ;;  %413 = vst [vmem:[%s984_s17 + $0x40] sm:$0xff] %v374_v19 }
 0x12d   : > { %v587_v20 = vpop.f32.mrf.mxu0  ;;  %v595_v21 = vpop.f32.mrf.mxu1 }
 0x12e   : > { %408 = vst [vmem:[%s984_s17 + $0x18] sm:$0xff] %v587_v20  ;;  %416 = vst [vmem:[%s984_s17 + $0x58] sm:$0xff] %v595_v21 }
 0x12f   : > { %v345_v22 = vpop.f32.mrf.mxu0  ;;  %v377_v23 = vpop.f32.mrf.mxu1 }
 0x130   : > { %406 = vst [vmem:[%s984_s17 + $0x8] sm:$0xff] %v345_v22  ;;  %414 = vst [vmem:[%s984_s17 + $0x48] sm:$0xff] %v377_v23 }
 0x131   : > { %v590_v24 = vpop.f32.mrf.mxu0  ;;  %v598_v25 = vpop.f32.mrf.mxu1 }
 0x132   : > { %411 = vst [vmem:[%s984_s17 + $0x30] sm:$0xff] %v590_v24  ;;  %419 = vst [vmem:[%s984_s17 + $0x70] sm:$0xff] %v598_v25 }
 0x133   : > { %v358_v26 = vpop.f32.mrf.mxu0  ;;  %v390_v27 = vpop.f32.mrf.mxu1 }
 0x134   : > { %409 = vst [vmem:[%s984_s17 + $0x20] sm:$0xff] %v358_v26  ;;  %417 = vst [vmem:[%s984_s17 + $0x60] sm:$0xff] %v390_v27 }
 0x135   : > { %v591_v28 = vpop.f32.mrf.mxu0  ;;  %v599_v29 = vpop.f32.mrf.mxu1 }
 0x136   : > { %412 = vst [vmem:[%s984_s17 + $0x38] sm:$0xff] %v591_v28  ;;  %420 = vst [vmem:[%s984_s17 + $0x78] sm:$0xff] %v599_v29 }
 0x137   : > { %v361_v30 = vpop.f32.mrf.mxu0  ;;  %v393_v31 = vpop.f32.mrf.mxu1 }
 0x138   : > { %410 = vst [vmem:[%s984_s17 + $0x28] sm:$0xff] %v361_v30  ;;  %418 = vst [vmem:[%s984_s17 + $0x68] sm:$0xff] %v393_v31 }
 0x139   : > { %760 = shalt.err (!%p757_p0)
}
 0x13a   : > { %s761_s3 = scalar_lea.hbm %s1003_s19, 2048  ;;  %s765_s7 = scalar_lea.hbm %s1054_s2, 4096 }
 0x13b   : > { %p762_p5 = scmp.ne.s32.totalorder %s1003_s19, %s761_s3  ;;  %p766_p4 = scmp.lt.s32.totalorder %s1003_s19, %s1054_s2 }
 0x13c   : > { %p767_p6 = scmp.lt.s32.totalorder %s765_s7, %s761_s3 }
 0x13d   : > { %p763_p2 = pnand %p762_p5, %p1070_p11 }
 0x13e   : > { %p768_p8 = por %p767_p6, %p766_p4 }
 0x13f   : > { %p764_p1 = pneg %p763_p2 }
 0x141   : > { %p769_p3 = pnand %p768_p8, %p764_p1 }
 0x143   : > { %772 = shalt.err (!%p769_p3)
}
 0x144   : > { %s822_s24 = smov 128   ;;  %s823_s15 = smov 8  }
 0x145   : > { %622 = dma.vmem_to_hbm [thread:$0]  (%p1070_p11), %s1005_s26, 2048, %s1003_s19, %s422_s13, %s822_s24, %s822_s24, %s823_s15  }
 0x146 PF: > { %s450_s17 = sand.u32 1, %s803_s9   ;;  %p1071_p7 = scmp.ne.s32.totalorder %s1060_s16, 0 }
 0x147   : > { %p1072_p9 = scmp.ge.s32.totalorder %s815_s12, 2  ;;  %s451_s25 = scalar_lea.sflag [#allocation4], %s450_s17 }
 0x149   : > { %p633_p10 = pnand %p1072_p9, %p1071_p7 }
 0x14b   : > { %p634_p12 = pneg %p633_p10 }
 0x14d   : > { %798 = dma.done.wait (%p634_p12), %s451_s25, 2048  }
 0x14e   : > { %800 = vsyncadd (%p634_p12), %s451_s25, 4294965248  ;;  %p16_p13 = scmp.ge.s32.totalorder %s893_s21, 4   ;;  %s1073_s9 = smov %s807_s10 }
 0x14f   : > { %s1074_s10 = smov %s811_s11  ;;  %s1075_s11 = smov %s913_s29 }
 0x150   : > { %s1076_s12 = smov %s893_s21  ;;  %18 = sbr.rel (!%p16_p13) target bundleno = 6 (0x6), region = 77 }
 0x155   :  { %456 = vsyncpa [#allocation3], 1 }
 0x156   :  { %458 = vsyncpa [#allocation3 + $0x1], 1 }
 0x157   :  { %459 = vsyncpa [#allocation6], 1 }
 0x158   :  { %460 = vsyncpa [#allocation4], 1 }
 0x159   :  { %462 = vsyncpa [#allocation4 + $0x1], 1 }

</bundles_post_ra>
